<compile_context>
chip_gen: v5e
topology: v5e:2x2
jax: 0.10.0
libtpu: 0.0.40
codegen_flags: <defaults>
</compile_context>

<pallas_src>
import functools

import jax
import jax.numpy as jnp
from jax.experimental import pallas as pl
from jax.experimental.pallas import tpu as pltpu

_LANE = 128


def _round_up(x, m):
    return ((x + m - 1) // m) * m


def _block_diag(w, k):
    """Replicate w (di, do) along the diagonal -> (k*di, k*do)."""
    if k == 1:
        return w
    di, do = w.shape
    out = jnp.zeros((k * di, k * do), dtype=w.dtype)
    for j in range(k):
        out = out.at[j * di:(j + 1) * di, j * do:(j + 1) * do].set(w)
    return out


def _readout_kernel(x_ref, w1_ref, b1_ref, w2_ref, b2_ref, o_ref, *,
                    total_rows, tile_rows):
    # x_ref : (TR, Dp)   streamed tile of (lane-packed) node features
    # w1_ref: (Dp, Hp)   resident (block-diagonal) first-layer weight
    # b1_ref: (1, Hp)    resident f32 bias
    # w2_ref: (Hp, Op)   resident f32 (block-diagonal) second-layer weight
    # b2_ref: (1, Op)    resident f32 bias
    # o_ref : (TR, Op)
    i = pl.program_id(0)
    x = x_ref[...]

    # Zero the padded rows of the ragged last tile: out-of-bounds output rows
    # are never written back, but uninitialized VMEM could otherwise create
    # NaN/Inf intermediates that trip NaN-checking / interpret-mode tooling.
    valid = total_rows - i * tile_rows
    row_ids = jax.lax.broadcasted_iota(jnp.int32, x.shape, 0)
    x = jnp.where(row_ids < valid, x, jnp.zeros_like(x))

    # First matmul on the MXU with an f32 accumulator (inputs may be bf16).
    h = jnp.dot(x, w1_ref[...], preferred_element_type=jnp.float32) + b1_ref[...]
    h = jnp.maximum(h, 0.0)  # ReLU in the f32 accumulator

    # Second matmul stays fully f32 (W2 is tiny and resident; the MXU has
    # huge slack here), avoiding the previous accumulator -> bf16 downcast.
    y = jnp.dot(h, w2_ref[...], preferred_element_type=jnp.float32) + b2_ref[...]
    o_ref[...] = y.astype(o_ref.dtype)


def readout_forward(x, w1, b1, w2, b2, *, tile_nodes=32768,
                    compute_dtype=jnp.bfloat16, out_dtype=None,
                    lane_pack=True, target_steps=4):
    """Per-node MLP readout: relu(x @ w1 + b1) @ w2 + b2.

    tile_nodes   : nodes per grid step before VMEM / multi-step caps.
    compute_dtype: read dtype for x / W1 (default bf16; accumulation is f32,
                   W2 and the second matmul are always f32).  Pass
                   jnp.float32 for a bit-exact f32 path.
    out_dtype    : output dtype (defaults to x.dtype).
    lane_pack    : pack 128//d_in nodes per 128-lane row (zero-copy reshape +
                   block-diagonal resident weights) when shapes allow.
    target_steps : keep at least this many grid steps so the "parallel" axis
                   can shard across both v7x TensorCores.
    """
    n, d_in = x.shape
    h_dim = w1.shape[1]
    d_out = w2.shape[1]
    if out_dtype is None:
        out_dtype = x.dtype
    if compute_dtype is None:
        compute_dtype = x.dtype

    x_c = x.astype(compute_dtype)
    w1_c = w1.astype(compute_dtype)
    w2_f = w2.astype(jnp.float32)                         # 2nd matmul stays f32
    b1_f = jnp.reshape(b1, (1, h_dim)).astype(jnp.float32)
    b2_f = jnp.reshape(b2, (1, d_out)).astype(jnp.float32)

    # ---- lane-dense packing -------------------------------------------------
    pack = 1
    if lane_pack and d_in <= _LANE and _LANE % d_in == 0:
        cand = _LANE // d_in
        if cand > 1 and n % cand == 0:                    # no padding copy of x
            pack = cand
    if pack > 1:
        x_p = x_c.reshape(n // pack, pack * d_in)         # zero-copy row-major view
        w1_p = _block_diag(w1_c, pack)                    # (pack*d_in, pack*H)
        w2_p = _block_diag(w2_f, pack)                    # (pack*H, pack*d_out)
        b1_p = jnp.tile(b1_f, (1, pack))
        b2_p = jnp.tile(b2_f, (1, pack))
    else:
        x_p, w1_p, w2_p, b1_p, b2_p = x_c, w1_c, w2_f, b1_f, b2_f

    rows, din_p = x_p.shape
    h_p = w1_p.shape[1]
    dout_p = w2_p.shape[1]

    # ---- tile sizing (lane-padding-aware VMEM accounting) -------------------
    in_bytes = jnp.dtype(compute_dtype).itemsize
    out_bytes = jnp.dtype(out_dtype).itemsize
    sublane = max(8, 32 // in_bytes)                      # f32:8, bf16:16, i8:32

    # Streamed (double-buffered) x + out blocks; last dims pad to 128 lanes.
    bytes_per_row = (2 * _round_up(din_p, _LANE) * in_bytes
                     + 2 * _round_up(dout_p, _LANE) * out_bytes)
    stream_budget = 24 * 1024 * 1024

    req_rows = max(1, tile_nodes // pack)
    cap_steps = pl.cdiv(rows, max(1, target_steps))       # keep >= target_steps
    cap_vmem = max(sublane, stream_budget // bytes_per_row)
    tile_rows = min(req_rows, cap_steps, cap_vmem, rows)
    tile_rows = _round_up(max(tile_rows, 1), sublane)

    grid = (pl.cdiv(rows, tile_rows),)

    # Resident (constant-index) weight/bias blocks, double-buffered, padded.
    weight_bytes = 2 * (
        _round_up(din_p, _LANE) * _round_up(h_p, _LANE) * in_bytes
        + _round_up(h_p, _LANE) * _round_up(dout_p, _LANE) * 4
        + 8 * (_round_up(h_p, _LANE) + _round_up(dout_p, _LANE)) * 4)
    vmem_need = tile_rows * bytes_per_row + weight_bytes
    # Explicit scoped-VMEM limit: large tiles would otherwise hit v5e's
    # 16 MiB default; stays well below v7x's 64 MiB physical VMEM.
    vmem_limit = int(min(44 * 1024 * 1024,
                         max(32 * 1024 * 1024, vmem_need * 5 // 4 + (2 << 20))))

    kernel = functools.partial(_readout_kernel, total_rows=rows,
                               tile_rows=tile_rows)

    out = pl.pallas_call(
        kernel,
        out_shape=jax.ShapeDtypeStruct((rows, dout_p), out_dtype),
        grid_spec=pltpu.PrefetchScalarGridSpec(
            num_scalar_prefetch=0,
            grid=grid,
            in_specs=[
                pl.BlockSpec((tile_rows, din_p), lambda i: (i, 0)),   # x (streamed)
                # Weights/biases: constant index_map -> fetched once, resident.
                pl.BlockSpec((din_p, h_p), lambda i: (0, 0)),         # W1
                pl.BlockSpec((1, h_p), lambda i: (0, 0)),             # b1
                pl.BlockSpec((h_p, dout_p), lambda i: (0, 0)),        # W2
                pl.BlockSpec((1, dout_p), lambda i: (0, 0)),          # b2
            ],
            out_specs=pl.BlockSpec((tile_rows, dout_p), lambda i: (i, 0)),
        ),
        compiler_params=pltpu.CompilerParams(
            dimension_semantics=("parallel",),            # shard steps over TCs
            vmem_limit_bytes=vmem_limit,
        ),
    )(x_p, w1_p, b1_p, w2_p, b2_p)

    if pack > 1:
        out = out.reshape(n, d_out)                       # zero-copy view back
    return out


def readout_reference(x, w1, b1, w2, b2):
    h = jnp.maximum(x @ w1 + b1, 0.0)
    return h @ w2 + b2


if __name__ == "__main__":
    key = jax.random.PRNGKey(0)
    k_x, k_w1, k_b1, k_w2, k_b2 = jax.random.split(key, 5)

    # Module-consistent small shapes: 1000 graph nodes (ragged vs. the tile),
    # 32-dim node features, 64-dim hidden layer, 8 readout outputs per node.
    N, D_IN, H, D_OUT = 1000, 32, 64, 8

    x = jax.random.normal(k_x, (N, D_IN), dtype=jnp.float32)
    w1 = jax.random.normal(k_w1, (D_IN, H), dtype=jnp.float32) / jnp.sqrt(D_IN)
    b1 = jax.random.normal(k_b1, (1, H), dtype=jnp.float32) * 0.01
    w2 = jax.random.normal(k_w2, (H, D_OUT), dtype=jnp.float32) / jnp.sqrt(H)
    b2 = jax.random.normal(k_b2, (1, D_OUT), dtype=jnp.float32) * 0.01

    ref = readout_reference(x, w1, b1, w2, b2)

    # 1) Exact f32 path, lane-packed, multi-step grid with a ragged last tile
    #    (250 packed rows -> 4 steps of 64 rows).
    out_f32 = jax.block_until_ready(
        readout_forward(x, w1, b1, w2, b2, compute_dtype=jnp.float32))
    assert out_f32.shape == (N, D_OUT)
    assert jnp.allclose(out_f32, ref, atol=1e-4, rtol=1e-4), "f32 packed mismatch"

    # 2) Exact f32 path, unpacked fallback layout (also ragged tiles).
    out_unpacked = jax.block_until_ready(
        readout_forward(x, w1, b1, w2, b2, compute_dtype=jnp.float32,
                        lane_pack=False, tile_nodes=512))
    assert jnp.allclose(out_unpacked, ref, atol=1e-4, rtol=1e-4), \
        "unpacked fallback mismatch"

    # 3) Default path: bf16 x/W1 reads, f32 accumulation, f32 second matmul.
    out_bf16 = jax.block_until_ready(readout_forward(x, w1, b1, w2, b2))
    assert out_bf16.shape == (N, D_OUT)
    assert jnp.allclose(out_bf16, ref, atol=5e-2, rtol=5e-2), "bf16 path mismatch"

    print("KERNEL_OK")
</pallas_src>

<mosaic_0001>
module attributes {stable_mosaic.version = 11 : i64} {
  func.func @_readout_kernel(%arg0: i32, %arg1: memref<64x128xf32, #tpu.memory_space<vmem>>, %arg2: memref<128x256xf32, #tpu.memory_space<vmem>>, %arg3: memref<1x256xf32, #tpu.memory_space<vmem>>, %arg4: memref<256x32xf32, #tpu.memory_space<vmem>>, %arg5: memref<1x32xf32, #tpu.memory_space<vmem>>, %arg6: memref<64x32xf32, #tpu.memory_space<vmem>>) attributes {dimension_semantics = [#tpu.dimension_semantics<parallel>], iteration_bounds = array<i64: 4>, scalar_prefetch = 0 : i64, scratch_operands = 0 : i64, tpu.core_type = #tpu.core_type<tc>, window_params = [{transform_indices = @transform_0, window_bounds = array<i64: 64, 128>}, {pipeline_mode = #tpu.pipeline_mode<synchronous>, transform_indices = @transform_1, window_bounds = array<i64: 128, 256>}, {pipeline_mode = #tpu.pipeline_mode<synchronous>, transform_indices = @transform_2, window_bounds = array<i64: 1, 256>}, {pipeline_mode = #tpu.pipeline_mode<synchronous>, transform_indices = @transform_3, window_bounds = array<i64: 256, 32>}, {pipeline_mode = #tpu.pipeline_mode<synchronous>, transform_indices = @transform_4, window_bounds = array<i64: 1, 32>}, {transform_indices = @transform_5, window_bounds = array<i64: 64, 32>}]} {
    %c0 = arith.constant 0 : index
    %c0_0 = arith.constant 0 : index
    %0 = vector.load %arg1[%c0, %c0_0] : memref<64x128xf32, #tpu.memory_space<vmem>>, vector<64x128xf32>
    %c64_i32 = arith.constant 64 : i32
    %1 = arith.muli %arg0, %c64_i32 : i32
    %c250_i32 = arith.constant 250 : i32
    %2 = arith.subi %c250_i32, %1 : i32
    %3 = tpu.iota {dimensions = array<i32: 0>} : vector<64x128xi32>
    %4 = vector.broadcast %2 : i32 to vector<64x128xi32>
    %5 = arith.cmpi slt, %3, %4 : vector<64x128xi32>
    %cst = arith.constant 0.000000e+00 : f32
    %6 = vector.broadcast %cst : f32 to vector<64x128xf32>
    %7 = arith.select %5, %0, %6 : vector<64x128xi1>, vector<64x128xf32>
    %c0_1 = arith.constant 0 : index
    %c0_2 = arith.constant 0 : index
    %8 = vector.load %arg2[%c0_1, %c0_2] : memref<128x256xf32, #tpu.memory_space<vmem>>, vector<128x256xf32>
    %cst_3 = arith.constant dense<0.000000e+00> : vector<64x256xf32>
    %9 = tpu.matmul %7, %8, %cst_3 {dimension_numbers = #tpu.dot_dimension_numbers<[1], [0], [0], [1], [0, 0, 1, 1], [], []>} : vector<64x128xf32>, vector<128x256xf32>, vector<64x256xf32> -> vector<64x256xf32>
    %c0_4 = arith.constant 0 : index
    %c0_5 = arith.constant 0 : index
    %10 = vector.load %arg3[%c0_4, %c0_5] : memref<1x256xf32, #tpu.memory_space<vmem>>, vector<1x256xf32>
    %11 = vector.broadcast %10 : vector<1x256xf32> to vector<64x256xf32>
    %12 = arith.addf %9, %11 : vector<64x256xf32>
    %cst_6 = arith.constant 0.000000e+00 : f32
    %13 = vector.broadcast %cst_6 : f32 to vector<64x256xf32>
    %14 = arith.maximumf %12, %13 : vector<64x256xf32>
    %c0_7 = arith.constant 0 : index
    %c0_8 = arith.constant 0 : index
    %15 = vector.load %arg4[%c0_7, %c0_8] : memref<256x32xf32, #tpu.memory_space<vmem>>, vector<256x32xf32>
    %cst_9 = arith.constant dense<0.000000e+00> : vector<64x32xf32>
    %16 = tpu.matmul %14, %15, %cst_9 {dimension_numbers = #tpu.dot_dimension_numbers<[1], [0], [0], [1], [0, 0, 1, 1], [], []>} : vector<64x256xf32>, vector<256x32xf32>, vector<64x32xf32> -> vector<64x32xf32>
    %c0_10 = arith.constant 0 : index
    %c0_11 = arith.constant 0 : index
    %17 = vector.load %arg5[%c0_10, %c0_11] : memref<1x32xf32, #tpu.memory_space<vmem>>, vector<1x32xf32>
    %18 = vector.broadcast %17 : vector<1x32xf32> to vector<64x32xf32>
    %19 = arith.addf %16, %18 : vector<64x32xf32>
    %c0_12 = arith.constant 0 : index
    %c0_13 = arith.constant 0 : index
    %20 = vector.load %arg6[%c0_12, %c0_13] : memref<64x32xf32, #tpu.memory_space<vmem>>, vector<64x32xf32>
    tpu.vector_store %arg6[%c0_12, %c0_13], %19 {strides = array<i32>} : memref<64x32xf32, #tpu.memory_space<vmem>>, vector<64x32xf32>,
    return
  }
  func.func @transform_0(%arg0: i32) -> (i32, i32) {
    %c0_i32 = arith.constant 0 : i32
    %c0_i32_0 = arith.constant 0 : i32
    return %arg0, %c0_i32 : i32, i32
  }
  func.func @transform_1(%arg0: i32) -> (i32, i32) {
    %c0_i32 = arith.constant 0 : i32
    %c0_i32_0 = arith.constant 0 : i32
    %c0_i32_1 = arith.constant 0 : i32
    return %c0_i32, %c0_i32_0 : i32, i32
  }
  func.func @transform_2(%arg0: i32) -> (i32, i32) {
    %c0_i32 = arith.constant 0 : i32
    %c0_i32_0 = arith.constant 0 : i32
    %c0_i32_1 = arith.constant 0 : i32
    return %c0_i32, %c0_i32_0 : i32, i32
  }
  func.func @transform_3(%arg0: i32) -> (i32, i32) {
    %c0_i32 = arith.constant 0 : i32
    %c0_i32_0 = arith.constant 0 : i32
    %c0_i32_1 = arith.constant 0 : i32
    return %c0_i32, %c0_i32_0 : i32, i32
  }
  func.func @transform_4(%arg0: i32) -> (i32, i32) {
    %c0_i32 = arith.constant 0 : i32
    %c0_i32_0 = arith.constant 0 : i32
    %c0_i32_1 = arith.constant 0 : i32
    return %c0_i32, %c0_i32_0 : i32, i32
  }
  func.func @transform_5(%arg0: i32) -> (i32, i32) {
    %c0_i32 = arith.constant 0 : i32
    %c0_i32_0 = arith.constant 0 : i32
    return %arg0, %c0_i32 : i32, i32
  }
}

</mosaic_0001>

<bundles_post_ra>
// kernel: tpu_custom_call.1
= control target key start
LH: loop header
LB: loop body
LE: loop exit
PB: predicated region body
PF: predicated region fallthrough
CT: control target
= control target key end

     0   :  { %10 = vsyncpa [#allocation3], 0  ;;  %s739_s18 = smov 0   ;;  %s921_s0 = inlined_call_operand.vmem [shape: f32[250,128], index: 0, kind: input, shape index: {}]   ;;  %s922_s1 = inlined_call_operand.hbm [shape: f32[128,256], index: 1, kind: input, shape index: {}]   ;;  %s923_s2 = inlined_call_operand.vmem [shape: f32[1,256], index: 2, kind: input, shape index: {}]   ;;  %s924_s3 = inlined_call_operand.vmem [shape: f32[256,32], index: 3, kind: input, shape index: {}]   ;;  %s925_s4 = inlined_call_operand.vmem [shape: f32[1,32], index: 4, kind: input, shape index: {}]   ;;  %s926_s5 = inlined_call_operand.vmem [shape: f32[250,32], index: 5, kind: output, shape index: {}]  }
   0x1 LB: > { %s168_s21 = sshll.u32 %s922_s1, 4  ;;  %s748_s22 = sadd.s32 4294967295, %s704_s18   ;;  %s704_s18 = sphi %s739_s18, %s16_s18   ;;  %s169_s21 = int_to_ptr.hbm [resolvable:$true] %s168_s21 }
   0x2   : > { %p614_p0 = scmp.ge.s32.totalorder %s704_s18, 1  ;;  %p157_p1 = scmp.lt.s32.totalorder %s704_s18, 5 }
   0x3   : > { %p650_p2 = scmp.eq.s32.totalorder %s748_s22, 0  ;;  %s706_s23 = smov [#allocation2]  }
   0x4   : > { %p158_p3 = pnand %p614_p0, %p157_p1  ;;  %s170_s24 = sshll.u32 %s706_s23, 4  ;;  %s171_s24 = int_to_ptr.vmem [resolvable:$true] %s170_s24 }
   0x5   : > { %s707_s25 = smov 256   ;;  %s708_s26 = smov 16  }
   0x6   : > { %p646_p4 = pneg %p158_p3  ;;  %204 = sbr.rel (%p158_p3) target bundleno = 367 (0x16f), region = 40 }
   0x8   : > { %p647_p5 = pnand %p650_p2, %p646_p4 }
   0xa   : > { %649 = dma.hbm_to_vmem [thread:$0]  (!%p647_p5), %s169_s21, 4096, %s171_s24, [#allocation3], %s707_s25, %s707_s25, %s708_s26  }
   0xb   : > { %699 = dma.done.wait (%p650_p2), [#allocation3], 4096  }
   0xc   : > { %701 = vsyncadd (%p650_p2), [#allocation3], 4294963200  ;;  %v311_v0 = vld [vmem:[#allocation2 + $0xf0] sm:$0xff]  ;;  %v309_v1 = vld [vmem:[#allocation2 + $0xe0] sm:$0xff]  ;;  %s619_s27 = sshll.u32 %s748_s22, 3  ;;  %s623_s28 = sshll.u32 %s748_s22, 6  ;;  %v255_v24 = vlaneseq }
   0xd   : > { %v312_v2 = vld [vmem:[#allocation2 + $0xf8] sm:$0xff]  ;;  %319 = vmatpush.msra.mxu0 %v311_v0  ;;  %v310_v3 = vld [vmem:[#allocation2 + $0xe8] sm:$0xff]  ;;  %v307_v4 = vld [vmem:[#allocation2 + $0xd0] sm:$0xff]  ;;  %p234_p6 = scmp.lt.s32.totalorder %s619_s27, 31  ;;  %s254_s30 = ssub.s32 250, %s623_s28  ;;  %vm535_vm8 = vcmask 261120  }
   0xe   : > { %360 = vmatpush.msra.mxu1 %v312_v2  ;;  %v308_v5 = vld [vmem:[#allocation2 + $0xd8] sm:$0xff]  ;;  %v305_v6 = vld [vmem:[#allocation2 + $0xc0] sm:$0xff]  ;;  %v306_v7 = vld [vmem:[#allocation2 + $0xc8] sm:$0xff]  ;;  %v758_v29 = vshrl.u32 %v255_v24, 7  ;;  %v767_v32 = vstv %s254_s30 }
   0xf   : > { %320 = vmatpush.msra.mxu0 %v309_v1  ;;  %v303_v8 = vld [vmem:[#allocation2 + $0xb0] sm:$0xff]  ;;  %v304_v9 = vld [vmem:[#allocation2 + $0xb8] sm:$0xff]  ;;  %v301_v10 = vld [vmem:[#allocation2 + $0xa0] sm:$0xff]  ;;  %s928_s27 = smov (!%p234_p6, %s619_s27), 31 }
  0x10   : > { %361 = vmatpush.msra.mxu1 %v310_v3  ;;  %v302_v11 = vld [vmem:[#allocation2 + $0xa8] sm:$0xff]  ;;  %v299_v12 = vld [vmem:[#allocation2 + $0x90] sm:$0xff]  ;;  %v300_v13 = vld [vmem:[#allocation2 + $0x98] sm:$0xff]  ;;  %s620_s29 = sshll.u32 %s928_s27, 3  ;;  %vm265_vm0 = vcmp.lt.s32.totalorder %v758_v29, %v767_v32  ;;  %v257_v36 = vadd.s32 8, %v758_v29  ;;  %v258_v38 = vadd.s32 16, %v758_v29 }
  0x11   : > { %321 = vmatpush.msra.mxu0 %v307_v4  ;;  %v297_v14 = vld [vmem:[#allocation2 + $0x80] sm:$0xff]  ;;  %v298_v15 = vld [vmem:[#allocation2 + $0x88] sm:$0xff]  ;;  %v295_v16 = vld [vmem:[#allocation2 + $0x70] sm:$0xff]  ;;  %s765_s8 = scalar_lea.vmem %s921_s0, %s620_s29  ;;  %v259_v40 = vadd.s32 24, %v758_v29  ;;  %v260_v45 = vadd.s32 32, %v758_v29  ;;  %v261_v56 = vadd.s32 40, %v758_v29  ;;  %s900_s15 = scalar_lea.vmem %s926_s5, %s620_s29 }
  0x12   : > { %362 = vmatpush.msra.mxu1 %v308_v5  ;;  %v296_v17 = vld [vmem:[#allocation2 + $0x78] sm:$0xff]  ;;  %v293_v18 = vld [vmem:[#allocation2 + $0x60] sm:$0xff]  ;;  %v294_v19 = vld [vmem:[#allocation2 + $0x68] sm:$0xff]  ;;  %vm266_vm1 = vcmp.lt.s32.totalorder %v257_v36, %v767_v32  ;;  %vm267_vm2 = vcmp.lt.s32.totalorder %v258_v38, %v767_v32  ;;  %v262_v2 = vadd.s32 48, %v758_v29 }
  0x13   : > { %322 = vmatpush.msra.mxu0 %v305_v6  ;;  %v291_v20 = vld [vmem:[#allocation2 + $0x50] sm:$0xff]  ;;  %v292_v21 = vld [vmem:[#allocation2 + $0x58] sm:$0xff]  ;;  %v289_v22 = vld [vmem:[#allocation2 + $0x40] sm:$0xff]  ;;  %vm268_vm3 = vcmp.lt.s32.totalorder %v259_v40, %v767_v32  ;;  %vm269_vm4 = vcmp.lt.s32.totalorder %v260_v45, %v767_v32  ;;  %vm270_vm5 = vcmp.lt.s32.totalorder %v261_v56, %v767_v32 }
  0x14   : > { %363 = vmatpush.msra.mxu1 %v306_v7  ;;  %v290_v23 = vld [vmem:[#allocation2 + $0x48] sm:$0xff]  ;;  %v287_v25 = vld [vmem:[#allocation2 + $0x30] sm:$0xff]  ;;  %v288_v26 = vld [vmem:[#allocation2 + $0x38] sm:$0xff]  ;;  %vm271_vm6 = vcmp.lt.s32.totalorder %v262_v2, %v767_v32 }
  0x15   : > { %323 = vmatpush.msra.mxu0 %v303_v8  ;;  %v285_v27 = vld [vmem:[#allocation2 + $0x20] sm:$0xff]  ;;  %v286_v28 = vld [vmem:[#allocation2 + $0x28] sm:$0xff]  ;;  %v283_v30 = vld [vmem:[#allocation2 + $0x10] sm:$0xff] }
  0x16   : > { %364 = vmatpush.msra.mxu1 %v304_v9  ;;  %v284_v31 = vld [vmem:[#allocation2 + $0x18] sm:$0xff]  ;;  %v281_v33 = vld [vmem:[#allocation2] sm:$0xff]  ;;  %v282_v34 = vld [vmem:[#allocation2 + $0x8] sm:$0xff]  ;;  %v263_v9 = vadd.s32 56, %v758_v29 }
  0x17   : > { %324 = vmatpush.msra.mxu0 %v301_v10  ;;  %v245_v35 = vld [vmem:[%s765_s8] sm:$0xff]  ;;  %v246_v37 = vld [vmem:[%s765_s8 + $0x8] sm:$0xff]  ;;  %v247_v39 = vld [vmem:[%s765_s8 + $0x10] sm:$0xff] }
  0x18   : > { %365 = vmatpush.msra.mxu1 %v302_v11  ;;  %v248_v41 = vld [vmem:[%s765_s8 + $0x18] sm:$0xff]  ;;  %v431_v43 = vld [vmem:[%s924_s3 + $0x70] sm:$0xff]  ;;  %v430_v47 = vld [vmem:[%s924_s3 + $0x68] sm:$0xff]  ;;  %vm272_vm7 = vcmp.lt.s32.totalorder %v263_v9, %v767_v32 }
  0x19   : > { %325 = vmatpush.msra.mxu0 %v299_v12  ;;  %v432_v42 = vld [vmem:[%s924_s3 + $0x78] sm:$0xff]  ;;  %v447_v46 = vld [vmem:[%s924_s3 + $0xf0] sm:$0xff]  ;;  %v446_v48 = vld [vmem:[%s924_s3 + $0xe8] sm:$0xff] }
  0x1a   : > { %366 = vmatpush.msra.mxu1 %v300_v13  ;;  %v448_v44 = vld [vmem:[%s924_s3 + $0xf8] sm:$0xff]  ;;  %453 = vmatpush.msra.mxu2 %v432_v42  ;;  %v429_v49 = vld [vmem:[%s924_s3 + $0x60] sm:$0xff]  ;;  %v427_v54 = vld [vmem:[%s924_s3 + $0x50] sm:$0xff] }
  0x1b   : > { %326 = vmatpush.msra.mxu0 %v297_v14  ;;  %494 = vmatpush.msra.mxu3 %v448_v44  ;;  %v445_v50 = vld [vmem:[%s924_s3 + $0xe0] sm:$0xff]  ;;  %v428_v52 = vld [vmem:[%s924_s3 + $0x58] sm:$0xff]  ;;  %v443_v55 = vld [vmem:[%s924_s3 + $0xd0] sm:$0xff] }
  0x1c   : > { %367 = vmatpush.msra.mxu1 %v298_v15  ;;  %454 = vmatpush.msra.mxu2 %v431_v43  ;;  %v249_v51 = vld [vmem:[%s765_s8 + $0x20] sm:$0xff]  ;;  %v444_v53 = vld [vmem:[%s924_s3 + $0xd8] sm:$0xff]  ;;  %v426_v57 = vld [vmem:[%s924_s3 + $0x48] sm:$0xff] }
  0x1d   : > { %327 = vmatpush.msra.mxu0 %v295_v16  ;;  %495 = vmatpush.msra.mxu3 %v447_v46  ;;  %v442_v58 = vld [vmem:[%s924_s3 + $0xc8] sm:$0xff]  ;;  %v425_v59 = vld [vmem:[%s924_s3 + $0x40] sm:$0xff]  ;;  %v424_v62 = vld [vmem:[%s924_s3 + $0x38] sm:$0xff] }
  0x1e   : > { %368 = vmatpush.msra.mxu1 %v296_v17  ;;  %455 = vmatpush.msra.mxu2 %v430_v47  ;;  %v441_v60 = vld [vmem:[%s924_s3 + $0xc0] sm:$0xff]  ;;  %v250_v61 = vld [vmem:[%s765_s8 + $0x28] sm:$0xff]  ;;  %v440_v63 = vld [vmem:[%s924_s3 + $0xb8] sm:$0xff] }
  0x1f   : > { %328 = vmatpush.msra.mxu0 %v293_v18  ;;  %496 = vmatpush.msra.mxu3 %v446_v48  ;;  %v423_v0 = vld [vmem:[%s924_s3 + $0x30] sm:$0xff]  ;;  %v422_v3 = vld [vmem:[%s924_s3 + $0x28] sm:$0xff]  ;;  %v421_v5 = vld [vmem:[%s924_s3 + $0x20] sm:$0xff] }
  0x20   : > { %369 = vmatpush.msra.mxu1 %v294_v19  ;;  %456 = vmatpush.msra.mxu2 %v429_v49  ;;  %v439_v1 = vld [vmem:[%s924_s3 + $0xb0] sm:$0xff]  ;;  %v438_v4 = vld [vmem:[%s924_s3 + $0xa8] sm:$0xff]  ;;  %v437_v6 = vld [vmem:[%s924_s3 + $0xa0] sm:$0xff] }
  0x21   : > { %329 = vmatpush.msra.mxu0 %v291_v20  ;;  %497 = vmatpush.msra.mxu3 %v445_v50  ;;  %v251_v7 = vld [vmem:[%s765_s8 + $0x30] sm:$0xff]  ;;  %v420_v8 = vld [vmem:[%s924_s3 + $0x18] sm:$0xff]  ;;  %v418_v13 = vld [vmem:[%s924_s3 + $0x8] sm:$0xff] }
  0x22   : > { %370 = vmatpush.msra.mxu1 %v292_v21  ;;  %457 = vmatpush.msra.mxu2 %v428_v52  ;;  %v252_v10 = vld [vmem:[%s765_s8 + $0x38] sm:$0xff]  ;;  %v419_v11 = vld [vmem:[%s924_s3 + $0x10] sm:$0xff]  ;;  %v417_v15 = vld [vmem:[%s924_s3] sm:$0xff] }
  0x23   : > { %330 = vmatpush.msra.mxu0 %v289_v22  ;;  %498 = vmatpush.msra.mxu3 %v444_v53  ;;  %v436_v12 = vld [vmem:[%s924_s3 + $0x98] sm:$0xff]  ;;  %v435_v14 = vld [vmem:[%s924_s3 + $0x90] sm:$0xff]  ;;  %v434_v16 = vld [vmem:[%s924_s3 + $0x88] sm:$0xff] }
  0x24   : > { %371 = vmatpush.msra.mxu1 %v290_v23  ;;  %458 = vmatpush.msra.mxu2 %v427_v54  ;;  %v433_v17 = vld [vmem:[%s924_s3 + $0x80] sm:$0xff] }
  0x25   : > { %331 = vmatpush.msra.mxu0 %v287_v25  ;;  %499 = vmatpush.msra.mxu3 %v443_v55  ;;  %v313_v18 = vld [vmem:[%s923_s2] sm:$0x3] }
  0x26   : > { %372 = vmatpush.msra.mxu1 %v288_v26  ;;  %459 = vmatpush.msra.mxu2 %v426_v57  ;;  %v315_v19 = vperm.slane %v313_v18, 0  ;;  %v316_v20 = vperm.slane %v313_v18, 1 }
  0x27   : > { %332 = vmatpush.msra.mxu0 %v285_v27  ;;  %500 = vmatpush.msra.mxu3 %v442_v58 }
  0x28   : > { %373 = vmatpush.msra.mxu1 %v286_v28  ;;  %460 = vmatpush.msra.mxu2 %v425_v59 }
  0x29   : > { %333 = vmatpush.msra.mxu0 %v283_v30  ;;  %501 = vmatpush.msra.mxu3 %v441_v60 }
  0x2a   : > { %374 = vmatpush.msra.mxu1 %v284_v31  ;;  %461 = vmatpush.msra.mxu2 %v424_v62 }
  0x2b   : > { %334 = vmatpush.msra.mxu0 %v281_v33  ;;  %502 = vmatpush.msra.mxu3 %v440_v63 }
  0x2c   : > { %375 = vmatpush.msra.mxu1 %v282_v34  ;;  %624 = vmatmul.msk.f32.vlgmr.msra.gmra.mxu0 %vm265_vm0, %v245_v35 }
  0x2d   : > { %632 = vmatmul.msk.f32.vlgmr.msra.gmra.mxu1 %vm265_vm0, %v245_v35  ;;  %462 = vmatpush.msra.mxu2 %v423_v0 }
  0x2e   : > { %503 = vmatpush.msra.mxu3 %v439_v1 }
  0x2f   : > { %463 = vmatpush.msra.mxu2 %v422_v3 }
  0x30   : > { %504 = vmatpush.msra.mxu3 %v438_v4 }
  0x31   : > { %464 = vmatpush.msra.mxu2 %v421_v5  ;;  %v663_v5 = vld [vmem:[%s925_s4] ss:$0 sm:$0xff] }
  0x32   : > { %505 = vmatpush.msra.mxu3 %v437_v6 }
  0x33   : > { %465 = vmatpush.msra.mxu2 %v420_v8 }
  0x34   : > { %625 = vmatmul.msk.f32.gmra.mxu0 %vm266_vm1, %v246_v37  ;;  %506 = vmatpush.msra.mxu3 %v436_v12 }
  0x35   : > { %633 = vmatmul.msk.f32.gmra.mxu1 %vm266_vm1, %v246_v37  ;;  %466 = vmatpush.msra.mxu2 %v419_v11 }
  0x36   : > { %507 = vmatpush.msra.mxu3 %v435_v14 }
  0x37   : > { %467 = vmatpush.msra.mxu2 %v418_v13 }
  0x38   : > { %508 = vmatpush.msra.mxu3 %v434_v16 }
  0x39   : > { %468 = vmatpush.msra.mxu2 %v417_v15 }
  0x3a   : > { %509 = vmatpush.msra.mxu3 %v433_v17 }
  0x3c   : > { %626 = vmatmul.msk.f32.gmra.mxu0 %vm267_vm2, %v247_v39 }
  0x3d   : > { %634 = vmatmul.msk.f32.gmra.mxu1 %vm267_vm2, %v247_v39 }
  0x44   : > { %627 = vmatmul.msk.f32.gmra.mxu0 %vm268_vm3, %v248_v41 }
  0x45   : > { %635 = vmatmul.msk.f32.gmra.mxu1 %vm268_vm3, %v248_v41 }
  0x4c   : > { %628 = vmatmul.msk.f32.gmra.mxu0 %vm269_vm4, %v249_v51 }
  0x4d   : > { %636 = vmatmul.msk.f32.gmra.mxu1 %vm269_vm4, %v249_v51 }
  0x54   : > { %629 = vmatmul.msk.f32.gmra.mxu0 %vm270_vm5, %v250_v61 }
  0x55   : > { %637 = vmatmul.msk.f32.gmra.mxu1 %vm270_vm5, %v250_v61 }
  0x5c   : > { %630 = vmatmul.msk.f32.gmra.mxu0 %vm271_vm6, %v251_v7 }
  0x5d   : > { %638 = vmatmul.msk.f32.gmra.mxu1 %vm271_vm6, %v251_v7 }
  0x64   : > { %631 = vmatmul.msk.f32.gmra.mxu0 %vm272_vm7, %v252_v10 }
  0x65   : > { %639 = vmatmul.msk.f32.gmra.mxu1 %vm272_vm7, %v252_v10 }
  0xa9   : > { %v336_v21 = vpop.f32.mrf.mxu0 }
  0xaa   : > { %v377_v22 = vpop.f32.mrf.mxu1  ;;  %v337_v23 = vadd.f32 %v336_v21, %v315_v19 }
  0xab   : > { %v378_v24 = vadd.f32 %v377_v22, %v316_v20 }
  0xac   : > { %v401_v25 = vmax.f32 %v337_v23, 0.0 }
  0xad   : > { %v402_v26 = vmax.f32 %v378_v24, 0.0 }
  0xae   : > { %469 = vmatmul.f32.vlgmr.msra.gmra.mxu2 %v401_v25 }
  0xaf   : > { %510 = vmatmul.f32.vlgmr.msra.gmra.mxu3 %v402_v26 }
  0xb1   : > { %v339_v27 = vpop.f32.mrf.mxu0 }
  0xb2   : > { %v380_v28 = vpop.f32.mrf.mxu1  ;;  %v340_v29 = vadd.f32 %v339_v27, %v315_v19 }
  0xb3   : > { %v381_v30 = vadd.f32 %v380_v28, %v316_v20 }
  0xb4   : > { %v403_v31 = vmax.f32 %v340_v29, 0.0 }
  0xb5   : > { %v404_v32 = vmax.f32 %v381_v30, 0.0 }
  0xb6   : > { %472 = vmatmul.f32.gmra.mxu2 %v403_v31 }
  0xb7   : > { %513 = vmatmul.f32.gmra.mxu3 %v404_v32 }
  0xb9   : > { %v342_v33 = vpop.f32.mrf.mxu0 }
  0xba   : > { %v383_v34 = vpop.f32.mrf.mxu1  ;;  %v343_v35 = vadd.f32 %v342_v33, %v315_v19 }
  0xbb   : > { %v384_v36 = vadd.f32 %v383_v34, %v316_v20 }
  0xbc   : > { %v405_v37 = vmax.f32 %v343_v35, 0.0 }
  0xbd   : > { %v406_v38 = vmax.f32 %v384_v36, 0.0 }
  0xbe   : > { %475 = vmatmul.f32.gmra.mxu2 %v405_v37 }
  0xbf   : > { %516 = vmatmul.f32.gmra.mxu3 %v406_v38 }
  0xc1   : > { %v345_v39 = vpop.f32.mrf.mxu0 }
  0xc2   : > { %v386_v40 = vpop.f32.mrf.mxu1  ;;  %v346_v41 = vadd.f32 %v345_v39, %v315_v19 }
  0xc3   : > { %v387_v42 = vadd.f32 %v386_v40, %v316_v20 }
  0xc4   : > { %v407_v43 = vmax.f32 %v346_v41, 0.0 }
  0xc5   : > { %v408_v44 = vmax.f32 %v387_v42, 0.0 }
  0xc6   : > { %478 = vmatmul.f32.gmra.mxu2 %v407_v43 }
  0xc7   : > { %519 = vmatmul.f32.gmra.mxu3 %v408_v44 }
  0xc9   : > { %v348_v45 = vpop.f32.mrf.mxu0 }
  0xca   : > { %v389_v46 = vpop.f32.mrf.mxu1  ;;  %v349_v47 = vadd.f32 %v348_v45, %v315_v19 }
  0xcb   : > { %v390_v48 = vadd.f32 %v389_v46, %v316_v20 }
  0xcc   : > { %v409_v49 = vmax.f32 %v349_v47, 0.0 }
  0xcd   : > { %v410_v50 = vmax.f32 %v390_v48, 0.0 }
  0xce   : > { %481 = vmatmul.f32.gmra.mxu2 %v409_v49 }
  0xcf   : > { %522 = vmatmul.f32.gmra.mxu3 %v410_v50 }
  0xd1   : > { %v351_v51 = vpop.f32.mrf.mxu0 }
  0xd2   : > { %v392_v52 = vpop.f32.mrf.mxu1  ;;  %v352_v53 = vadd.f32 %v351_v51, %v315_v19 }
  0xd3   : > { %v393_v54 = vadd.f32 %v392_v52, %v316_v20 }
  0xd4   : > { %v411_v55 = vmax.f32 %v352_v53, 0.0 }
  0xd5   : > { %v412_v56 = vmax.f32 %v393_v54, 0.0 }
  0xd6   : > { %484 = vmatmul.f32.gmra.mxu2 %v411_v55 }
  0xd7   : > { %525 = vmatmul.f32.gmra.mxu3 %v412_v56 }
  0xd9   : > { %v354_v57 = vpop.f32.mrf.mxu0 }
  0xda   : > { %v395_v58 = vpop.f32.mrf.mxu1  ;;  %v355_v59 = vadd.f32 %v354_v57, %v315_v19 }
  0xdb   : > { %v396_v60 = vadd.f32 %v395_v58, %v316_v20 }
  0xdc   : > { %v413_v61 = vmax.f32 %v355_v59, 0.0 }
  0xdd   : > { %v414_v62 = vmax.f32 %v396_v60, 0.0 }
  0xde   : > { %487 = vmatmul.f32.gmra.mxu2 %v413_v61 }
  0xdf   : > { %528 = vmatmul.f32.gmra.mxu3 %v414_v62 }
  0xe1   : > { %v357_v63 = vpop.f32.mrf.mxu0 }
  0xe2   : > { %v398_v0 = vpop.f32.mrf.mxu1  ;;  %v358_v1 = vadd.f32 %v357_v63, %v315_v19 }
  0xe3   : > { %v399_v2 = vadd.f32 %v398_v0, %v316_v20 }
  0xe4   : > { %v415_v3 = vmax.f32 %v358_v1, 0.0 }
  0xe5   : > { %v416_v4 = vmax.f32 %v399_v2, 0.0 }
  0xe6   : > { %490 = vmatmul.f32.gmra.mxu2 %v415_v3 }
  0xe7   : > { %531 = vmatmul.f32.gmra.mxu3 %v416_v4 }
 0x131   : > { %v470_v6 = vpop.f32.mrf.mxu2 }
 0x132   : > { %v511_v7 = vpop.f32.mrf.mxu3  ;;  %v471_v8 = vadd.f32 %v663_v5, %v470_v6 }
 0x134   : > { %v512_v9 = vadd.f32 %v511_v7, %v471_v8 }
 0x136   : > { %536 = vst.msk [vmem:[%s900_s15] sm:$0xff] %vm535_vm8, %v512_v9 }
 0x139   : > { %v473_v10 = vpop.f32.mrf.mxu2 }
 0x13a   : > { %v514_v11 = vpop.f32.mrf.mxu3  ;;  %v474_v12 = vadd.f32 %v663_v5, %v473_v10 }
 0x13c   : > { %v515_v13 = vadd.f32 %v514_v11, %v474_v12 }
 0x13e   : > { %537 = vst.msk [vmem:[%s900_s15 + $0x8] sm:$0xff] %vm535_vm8, %v515_v13 }
 0x141   : > { %v476_v14 = vpop.f32.mrf.mxu2 }
 0x142   : > { %v517_v15 = vpop.f32.mrf.mxu3  ;;  %v477_v16 = vadd.f32 %v663_v5, %v476_v14 }
 0x144   : > { %v518_v17 = vadd.f32 %v517_v15, %v477_v16 }
 0x146   : > { %538 = vst.msk [vmem:[%s900_s15 + $0x10] sm:$0xff] %vm535_vm8, %v518_v17 }
 0x149   : > { %v479_v18 = vpop.f32.mrf.mxu2 }
 0x14a   : > { %v520_v19 = vpop.f32.mrf.mxu3  ;;  %v480_v20 = vadd.f32 %v663_v5, %v479_v18 }
 0x14c   : > { %v521_v21 = vadd.f32 %v520_v19, %v480_v20 }
 0x14e   : > { %539 = vst.msk [vmem:[%s900_s15 + $0x18] sm:$0xff] %vm535_vm8, %v521_v21 }
 0x151   : > { %v482_v22 = vpop.f32.mrf.mxu2 }
 0x152   : > { %v523_v23 = vpop.f32.mrf.mxu3  ;;  %v483_v24 = vadd.f32 %v663_v5, %v482_v22 }
 0x154   : > { %v524_v25 = vadd.f32 %v523_v23, %v483_v24 }
 0x156   : > { %540 = vst.msk [vmem:[%s900_s15 + $0x20] sm:$0xff] %vm535_vm8, %v524_v25 }
 0x159   : > { %v485_v26 = vpop.f32.mrf.mxu2 }
 0x15a   : > { %v526_v27 = vpop.f32.mrf.mxu3  ;;  %v486_v28 = vadd.f32 %v663_v5, %v485_v26 }
 0x15c   : > { %v527_v29 = vadd.f32 %v526_v27, %v486_v28 }
 0x15e   : > { %541 = vst.msk [vmem:[%s900_s15 + $0x28] sm:$0xff] %vm535_vm8, %v527_v29 }
 0x161   : > { %v488_v30 = vpop.f32.mrf.mxu2 }
 0x162   : > { %v529_v31 = vpop.f32.mrf.mxu3  ;;  %v489_v32 = vadd.f32 %v663_v5, %v488_v30 }
 0x164   : > { %v530_v33 = vadd.f32 %v529_v31, %v489_v32 }
 0x166   : > { %542 = vst.msk [vmem:[%s900_s15 + $0x30] sm:$0xff] %vm535_vm8, %v530_v33 }
 0x169   : > { %v491_v34 = vpop.f32.mrf.mxu2 }
 0x16a   : > { %v532_v35 = vpop.f32.mrf.mxu3  ;;  %v492_v36 = vadd.f32 %v663_v5, %v491_v34 }
 0x16c   : > { %v533_v37 = vadd.f32 %v532_v35, %v492_v36 }
 0x16e   : > { %543 = vst.msk [vmem:[%s900_s15 + $0x38] sm:$0xff] %vm535_vm8, %v533_v37 }
 0x16f PF: > { %s16_s18 = sadd.s32 1, %s704_s18  }
 0x170   : > { %p13_p7 = scmp.ge.s32.totalorder %s16_s18, 6  }
 0x172   :  { %15 = sbr.rel (!%p13_p7) target bundleno = 1 (0x1), region = 75 }
 0x177   :  { %566 = vsyncpa [#allocation3], 1 }
 0x178   :  { %568 = vsyncpa [#allocation3 + $0x1], 1 }

</bundles_post_ra>
